<compile_context>
chip_gen: v5e
topology: v5e:2x2
jax: 0.10.0
libtpu: 0.0.40
codegen_flags: <defaults>
</compile_context>

<pallas_src>
import functools
import numpy as np
import jax
import jax.numpy as jnp
from jax.experimental import pallas as pl
from jax.experimental.pallas import tpu as pltpu

LANE = 128


def _round_up(a, b):
    return ((a + b - 1) // b) * b


# ----------------------------------------------------------------------------
# Pallas kernel: the RE classification head
# ----------------------------------------------------------------------------
def re_head_kernel(hs_ref, ts_ref, wh_ref, bh_ref, wt_ref, bt_ref,
                   wbf_ref, bbf_ref, out_ref):
    ncp = wbf_ref.shape[1] // 2          # padded fea/class lane width (= 128)

    # Two dense extractor matmuls (block-gather expansion already folded into
    # the weights at init), f32 accumulation, tanh in f32.
    hs_e = jnp.tanh(jnp.dot(hs_ref[...], wh_ref[...],
                            preferred_element_type=jnp.float32) + bh_ref[...])
    ts_e = jnp.tanh(jnp.dot(ts_ref[...], wt_ref[...],
                            preferred_element_type=jnp.float32) + bt_ref[...])

    # Block-bilinear outer product == elementwise product of the pre-expanded
    # halves; bf16 (the next matmul consumes bf16 anyway), pure VPU.
    bl = hs_e.astype(jnp.bfloat16) * ts_e.astype(jnp.bfloat16)     # [tb, ebs]

    # One MXU pass for [fea | logits]: bl @ [wb | wb@wf] + [bb | bb@wf+bf].
    # Padded class lanes of the bias are -1e9 so log-softmax ignores them.
    combined = jnp.dot(bl, wbf_ref[...],
                       preferred_element_type=jnp.float32) + bbf_ref[...]
    logits = combined[:, ncp:]                                     # [tb, 128]

    # log-softmax in f32.
    m = jnp.max(logits, axis=1, keepdims=True)
    z = logits - m
    lse = jnp.log(jnp.sum(jnp.exp(z), axis=1, keepdims=True))
    logp = z - lse

    # Lane-dense packed writeback: [fea | logits | logp], all 128-aligned.
    out_ref[:, 0:2 * ncp] = combined
    out_ref[:, 2 * ncp:3 * ncp] = logp


def re_head_pallas(hs, ts, params):
    """hs, ts: [B, H] mean-pooled head/tail entity reps (bf16)."""
    B, H = hs.shape
    wh, bh = params["wh"], params["bh"]
    wt, bt = params["wt"], params["bt"]
    wbf, bbf = params["wbf"], params["bbf"]
    ebs = wbf.shape[0]
    ncp = wbf.shape[1] // 2
    out_lanes = 3 * ncp

    # Row tiling: fill the 256-wide MXU M dim on v6e/v7x, and give v7x's two
    # TensorCores at least 2 grid steps once the batch is big enough.
    Bp = _round_up(B, 8)
    if Bp <= 256:
        tb = Bp
    else:
        tb = min(512, _round_up((Bp + 1) // 2, 8))
    Bp = _round_up(Bp, tb)
    if Bp > B:
        pad = ((0, Bp - B), (0, 0))
        hs = jnp.pad(hs, pad)
        ts = jnp.pad(ts, pad)
    grid = (Bp // tb,)

    def full2d(a):
        return pl.BlockSpec(a.shape, lambda i: (0, 0))

    flops = int(2 * Bp * (2 * H * ebs + ebs * 2 * ncp))
    transcendentals = int(Bp * (2 * ebs + ncp))            # tanh + exp
    bytes_accessed = int(2 * Bp * H * 2 + Bp * out_lanes * 4
                         + (wh.size + wt.size + wbf.size) * 2
                         + (bh.size + bt.size + bbf.size) * 4)

    packed = pl.pallas_call(
        re_head_kernel,
        out_shape=jax.ShapeDtypeStruct((Bp, out_lanes), jnp.float32),
        grid_spec=pltpu.PrefetchScalarGridSpec(
            num_scalar_prefetch=0,
            grid=grid,
            in_specs=[pl.BlockSpec((tb, H), lambda i: (i, 0)),
                      pl.BlockSpec((tb, H), lambda i: (i, 0)),
                      full2d(wh), full2d(bh),
                      full2d(wt), full2d(bt),
                      full2d(wbf), full2d(bbf)],
            out_specs=pl.BlockSpec((tb, out_lanes), lambda i: (i, 0)),
        ),
        compiler_params=pltpu.CompilerParams(
            dimension_semantics=("parallel",)),
        cost_estimate=pl.CostEstimate(flops=flops,
                                      transcendentals=transcendentals,
                                      bytes_accessed=bytes_accessed),
    )(hs, ts, wh, bh, wt, bt, wbf, bbf)
    return packed[:B]


# ----------------------------------------------------------------------------
# Module wrapper (parameter setup, stand-in encoder, gather glue)
# ----------------------------------------------------------------------------
class Bert4SemiRE2Pallas:
    def __init__(self, key, hidden_size=32, emb_size=32, block_size=8,
                 fea_size=16, num_class=19, vocab_size=50):
        assert emb_size % block_size == 0
        self.hidden_size = hidden_size
        self.emb_size = emb_size
        self.block_size = block_size
        self.fea_size = fea_size
        self.num_class = num_class

        H, E, bs = hidden_size, emb_size, block_size
        ebs = E * bs
        ncp = _round_up(max(num_class, fea_size), LANE)      # = 128
        self.ncp = ncp

        ks = jax.random.split(key, 8)
        s = 0.05
        # TODO(synk): the pretrained HF BERT (`self.model`) and the >512-token
        # re-stitching in process_long_input are not reproducible here; a tiny
        # deterministic embedding+linear encoder stands in for it.
        self.emb_table = jax.random.normal(ks[0], (vocab_size, H),
                                           jnp.float32) * s
        self.enc_w = jax.random.normal(ks[1], (H, H), jnp.float32) * s
        self.enc_b = jnp.zeros((H,), jnp.float32)

        def linear(k, in_f, out_f):
            # PyTorch nn.Linear weight is [out, in]; store transposed [in, out]
            w = np.asarray(jax.random.normal(k, (out_f, in_f), jnp.float32)) * s
            b = np.zeros((1, out_f), np.float32)
            return w.T, b

        wh, bh = linear(ks[2], H, E)                 # head_extractor
        wt, bt = linear(ks[3], H, E)                 # tail_extractor
        wb, bb = linear(ks[4], ebs, fea_size)        # bilinear
        wf, bf = linear(ks[5], fea_size, num_class)  # final_linear

        # Column maps of the block-bilinear expansion:
        #   bl[b, k*bs*bs + i*bs + j] = hs[b, k*bs + i] * ts[b, k*bs + j]
        c = np.arange(ebs)
        k_idx = c // (bs * bs)
        colmap_h = k_idx * bs + (c % (bs * bs)) // bs
        colmap_t = k_idx * bs + (c % bs)

        # Fold the expansion (a pure column gather, commutes with tanh) into
        # the extractor weights; keep head/tail as two dense matmuls (no
        # half-zero block-diagonal weight).
        wh_f, bh_f = wh[:, colmap_h], bh[:, colmap_h]        # [H, ebs], [1, ebs]
        wt_f, bt_f = wt[:, colmap_t], bt[:, colmap_t]

        # Lane-pad bilinear / classifier to 128 lanes, then fold the classifier
        # into the bilinear:  combined = bl @ [wb | wb@wf] + [bb | bb@wf + bf].
        # Padded class lanes get a -1e9 bias so log-softmax ignores them.
        wb_p = np.zeros((ebs, ncp), np.float32); wb_p[:, :fea_size] = wb
        bb_p = np.zeros((1, ncp), np.float32);   bb_p[:, :fea_size] = bb
        wf_p = np.zeros((ncp, ncp), np.float32); wf_p[:fea_size, :num_class] = wf
        bf_p = np.full((1, ncp), -1e9, np.float32); bf_p[:, :num_class] = bf

        wbf = np.concatenate([wb_p, wb_p @ wf_p], axis=1)    # [ebs, 2*ncp]
        bbf = np.concatenate([bb_p, bb_p @ wf_p + bf_p], axis=1)

        self.params = dict(
            wh=jnp.asarray(wh_f, jnp.bfloat16),
            bh=jnp.asarray(bh_f, jnp.float32),
            wt=jnp.asarray(wt_f, jnp.bfloat16),
            bt=jnp.asarray(bt_f, jnp.float32),
            wbf=jnp.asarray(wbf, jnp.bfloat16),
            bbf=jnp.asarray(bbf, jnp.float32),
        )

    def _encode_sequence(self, input_ids, attention_mask):
        # stand-in for process_long_input(self.model, ...): [B, L, H]
        x = self.emb_table[input_ids]
        x = jnp.tanh(x @ self.enc_w + self.enc_b)
        return x * attention_mask[..., None].astype(x.dtype)

    @functools.partial(jax.jit, static_argnums=0)
    def forward(self, input_ids, attention_mask, subj_pos, obj_pos, relations):
        seq_out = self._encode_sequence(input_ids, attention_mask)   # [B, L, H]

        # TODO(synk): entity mean-pooling is left as XLA glue; for realistic
        # pair counts it should be fused into the kernel via scalar-prefetch
        # row gather (memory_space=pl.ANY on seq_out) to avoid the hs/ts HBM
        # round-trip.
        hs_raw = jnp.mean(
            jnp.take_along_axis(seq_out, subj_pos[..., None], axis=1), axis=1)
        ts_raw = jnp.mean(
            jnp.take_along_axis(seq_out, obj_pos[..., None], axis=1), axis=1)

        # bf16 activations: halves the only per-step input DMA; MXU consumes
        # bf16 anyway (f32 accumulation in-kernel).
        packed = re_head_pallas(hs_raw.astype(jnp.bfloat16),
                                ts_raw.astype(jnp.bfloat16),
                                self.params)                         # [B, 384]
        ncp = self.ncp
        fea = packed[:, :self.fea_size]
        logits = packed[:, ncp:ncp + self.num_class]
        logp = packed[:, 2 * ncp:2 * ncp + self.num_class]

        # F.nll_loss(log_softmax(logits), relations)  (mean reduction)
        loss = -jnp.mean(logp[jnp.arange(logits.shape[0]), relations])
        return logits, loss, fea


# ----------------------------------------------------------------------------
if __name__ == "__main__":
    key = jax.random.PRNGKey(0)
    k_model, k_ids = jax.random.split(key)

    B, L = 2, 8
    model = Bert4SemiRE2Pallas(k_model, hidden_size=32, emb_size=32,
                               block_size=8, fea_size=16, num_class=19,
                               vocab_size=50)

    input_ids = jax.random.randint(k_ids, (B, L), 0, 50, dtype=jnp.int32)
    attention_mask = jnp.ones((B, L), jnp.int32)
    subj_pos = jnp.array([[1, 2], [3, 4]], jnp.int32)
    obj_pos = jnp.array([[5, 6], [0, 7]], jnp.int32)
    relations = jnp.array([3, 7], jnp.int32)

    logits, loss, fea = model.forward(input_ids, attention_mask,
                                      subj_pos, obj_pos, relations)
    jax.block_until_ready((logits, loss, fea))

    assert logits.shape == (B, 19)
    assert fea.shape == (B, 16)
    assert bool(jnp.isfinite(loss))
    assert bool(jnp.all(jnp.isfinite(logits)))
    print("KERNEL_OK")
</pallas_src>

<mosaic_0001>
module attributes {stable_mosaic.version = 11 : i64} {
  func.func @re_head_kernel(%arg0: i32, %arg1: memref<8x32xbf16, #tpu.memory_space<vmem>>, %arg2: memref<8x32xbf16, #tpu.memory_space<vmem>>, %arg3: memref<32x256xbf16, #tpu.memory_space<vmem>>, %arg4: memref<1x256xf32, #tpu.memory_space<vmem>>, %arg5: memref<32x256xbf16, #tpu.memory_space<vmem>>, %arg6: memref<1x256xf32, #tpu.memory_space<vmem>>, %arg7: memref<256x256xbf16, #tpu.memory_space<vmem>>, %arg8: memref<1x256xf32, #tpu.memory_space<vmem>>, %arg9: memref<8x384xf32, #tpu.memory_space<vmem>>) attributes {dimension_semantics = [#tpu.dimension_semantics<parallel>], iteration_bounds = array<i64: 1>, scalar_prefetch = 0 : i64, scratch_operands = 0 : i64, tpu.core_type = #tpu.core_type<tc>, window_params = [{transform_indices = @transform_0, window_bounds = array<i64: 8, 32>}, {transform_indices = @transform_1, window_bounds = array<i64: 8, 32>}, {pipeline_mode = #tpu.pipeline_mode<synchronous>, transform_indices = @transform_2, window_bounds = array<i64: 32, 256>}, {pipeline_mode = #tpu.pipeline_mode<synchronous>, transform_indices = @transform_3, window_bounds = array<i64: 1, 256>}, {pipeline_mode = #tpu.pipeline_mode<synchronous>, transform_indices = @transform_4, window_bounds = array<i64: 32, 256>}, {pipeline_mode = #tpu.pipeline_mode<synchronous>, transform_indices = @transform_5, window_bounds = array<i64: 1, 256>}, {pipeline_mode = #tpu.pipeline_mode<synchronous>, transform_indices = @transform_6, window_bounds = array<i64: 256, 256>}, {pipeline_mode = #tpu.pipeline_mode<synchronous>, transform_indices = @transform_7, window_bounds = array<i64: 1, 256>}, {transform_indices = @transform_8, window_bounds = array<i64: 8, 384>}]} {
    %c0 = arith.constant 0 : index
    %c0_0 = arith.constant 0 : index
    %0 = vector.load %arg1[%c0, %c0_0] : memref<8x32xbf16, #tpu.memory_space<vmem>>, vector<8x32xbf16>
    %c0_1 = arith.constant 0 : index
    %c0_2 = arith.constant 0 : index
    %1 = vector.load %arg3[%c0_1, %c0_2] : memref<32x256xbf16, #tpu.memory_space<vmem>>, vector<32x256xbf16>
    %cst = arith.constant dense<0.000000e+00> : vector<8x256xf32>
    %2 = tpu.matmul %0, %1, %cst {dimension_numbers = #tpu.dot_dimension_numbers<[1], [0], [0], [1], [0, 0, 1, 1], [], []>} : vector<8x32xbf16>, vector<32x256xbf16>, vector<8x256xf32> -> vector<8x256xf32>
    %c0_3 = arith.constant 0 : index
    %c0_4 = arith.constant 0 : index
    %3 = vector.load %arg4[%c0_3, %c0_4] : memref<1x256xf32, #tpu.memory_space<vmem>>, vector<1x256xf32>
    %4 = vector.broadcast %3 : vector<1x256xf32> to vector<8x256xf32>
    %5 = arith.addf %2, %4 : vector<8x256xf32>
    %6 = math.tanh %5 : vector<8x256xf32>
    %c0_5 = arith.constant 0 : index
    %c0_6 = arith.constant 0 : index
    %7 = vector.load %arg2[%c0_5, %c0_6] : memref<8x32xbf16, #tpu.memory_space<vmem>>, vector<8x32xbf16>
    %c0_7 = arith.constant 0 : index
    %c0_8 = arith.constant 0 : index
    %8 = vector.load %arg5[%c0_7, %c0_8] : memref<32x256xbf16, #tpu.memory_space<vmem>>, vector<32x256xbf16>
    %cst_9 = arith.constant dense<0.000000e+00> : vector<8x256xf32>
    %9 = tpu.matmul %7, %8, %cst_9 {dimension_numbers = #tpu.dot_dimension_numbers<[1], [0], [0], [1], [0, 0, 1, 1], [], []>} : vector<8x32xbf16>, vector<32x256xbf16>, vector<8x256xf32> -> vector<8x256xf32>
    %c0_10 = arith.constant 0 : index
    %c0_11 = arith.constant 0 : index
    %10 = vector.load %arg6[%c0_10, %c0_11] : memref<1x256xf32, #tpu.memory_space<vmem>>, vector<1x256xf32>
    %11 = vector.broadcast %10 : vector<1x256xf32> to vector<8x256xf32>
    %12 = arith.addf %9, %11 : vector<8x256xf32>
    %13 = math.tanh %12 : vector<8x256xf32>
    %14 = arith.truncf %6 : vector<8x256xf32> to vector<8x256xbf16>
    %15 = arith.truncf %13 : vector<8x256xf32> to vector<8x256xbf16>
    %16 = arith.mulf %14, %15 : vector<8x256xbf16>
    %c0_12 = arith.constant 0 : index
    %c0_13 = arith.constant 0 : index
    %17 = vector.load %arg7[%c0_12, %c0_13] : memref<256x256xbf16, #tpu.memory_space<vmem>>, vector<256x256xbf16>
    %cst_14 = arith.constant dense<0.000000e+00> : vector<8x256xf32>
    %18 = tpu.matmul %16, %17, %cst_14 {dimension_numbers = #tpu.dot_dimension_numbers<[1], [0], [0], [1], [0, 0, 1, 1], [], []>} : vector<8x256xbf16>, vector<256x256xbf16>, vector<8x256xf32> -> vector<8x256xf32>
    %c0_15 = arith.constant 0 : index
    %c0_16 = arith.constant 0 : index
    %19 = vector.load %arg8[%c0_15, %c0_16] : memref<1x256xf32, #tpu.memory_space<vmem>>, vector<1x256xf32>
    %20 = vector.broadcast %19 : vector<1x256xf32> to vector<8x256xf32>
    %21 = arith.addf %18, %20 : vector<8x256xf32>
    %22 = vector.extract_strided_slice %21 {offsets = [0, 128], sizes = [8, 128], strides = [1, 1]} : vector<8x256xf32> to vector<8x128xf32>
    %cst_17 = arith.constant dense<0xFF800000> : vector<8xf32>
    %23 = vector.multi_reduction <maximumf>, %22, %cst_17 [1] : vector<8x128xf32> to vector<8xf32>
    %24 = vector.shape_cast %23 : vector<8xf32> to vector<8x1xf32>
    %25 = vector.broadcast %24 : vector<8x1xf32> to vector<8x128xf32>
    %26 = arith.subf %22, %25 : vector<8x128xf32>
    %27 = math.exp %26 : vector<8x128xf32>
    %cst_18 = arith.constant dense<0.000000e+00> : vector<8xf32>
    %28 = vector.multi_reduction <add>, %27, %cst_18 [1] : vector<8x128xf32> to vector<8xf32>
    %29 = vector.shape_cast %28 : vector<8xf32> to vector<8x1xf32>
    %30 = math.log %29 : vector<8x1xf32>
    %31 = vector.broadcast %30 : vector<8x1xf32> to vector<8x128xf32>
    %32 = arith.subf %26, %31 : vector<8x128xf32>
    %c0_19 = arith.constant 0 : index
    %c0_20 = arith.constant 0 : index
    %33 = vector.load %arg9[%c0_19, %c0_20] : memref<8x384xf32, #tpu.memory_space<vmem>>, vector<8x256xf32>
    tpu.vector_store %arg9[%c0_19, %c0_20], %21 {strides = array<i32>} : memref<8x384xf32, #tpu.memory_space<vmem>>, vector<8x256xf32>,
    %c0_21 = arith.constant 0 : index
    %c256 = arith.constant 256 : index
    %34 = vector.load %arg9[%c0_21, %c256] : memref<8x384xf32, #tpu.memory_space<vmem>>, vector<8x128xf32>
    tpu.vector_store %arg9[%c0_21, %c256], %32 {strides = array<i32>} : memref<8x384xf32, #tpu.memory_space<vmem>>, vector<8x128xf32>,
    return
  }
  func.func @transform_0(%arg0: i32) -> (i32, i32) {
    %c0_i32 = arith.constant 0 : i32
    %c0_i32_0 = arith.constant 0 : i32
    return %arg0, %c0_i32 : i32, i32
  }
  func.func @transform_1(%arg0: i32) -> (i32, i32) {
    %c0_i32 = arith.constant 0 : i32
    %c0_i32_0 = arith.constant 0 : i32
    return %arg0, %c0_i32 : i32, i32
  }
  func.func @transform_2(%arg0: i32) -> (i32, i32) {
    %c0_i32 = arith.constant 0 : i32
    %c0_i32_0 = arith.constant 0 : i32
    %c0_i32_1 = arith.constant 0 : i32
    return %c0_i32, %c0_i32_0 : i32, i32
  }
  func.func @transform_3(%arg0: i32) -> (i32, i32) {
    %c0_i32 = arith.constant 0 : i32
    %c0_i32_0 = arith.constant 0 : i32
    %c0_i32_1 = arith.constant 0 : i32
    return %c0_i32, %c0_i32_0 : i32, i32
  }
  func.func @transform_4(%arg0: i32) -> (i32, i32) {
    %c0_i32 = arith.constant 0 : i32
    %c0_i32_0 = arith.constant 0 : i32
    %c0_i32_1 = arith.constant 0 : i32
    return %c0_i32, %c0_i32_0 : i32, i32
  }
  func.func @transform_5(%arg0: i32) -> (i32, i32) {
    %c0_i32 = arith.constant 0 : i32
    %c0_i32_0 = arith.constant 0 : i32
    %c0_i32_1 = arith.constant 0 : i32
    return %c0_i32, %c0_i32_0 : i32, i32
  }
  func.func @transform_6(%arg0: i32) -> (i32, i32) {
    %c0_i32 = arith.constant 0 : i32
    %c0_i32_0 = arith.constant 0 : i32
    %c0_i32_1 = arith.constant 0 : i32
    return %c0_i32, %c0_i32_0 : i32, i32
  }
  func.func @transform_7(%arg0: i32) -> (i32, i32) {
    %c0_i32 = arith.constant 0 : i32
    %c0_i32_0 = arith.constant 0 : i32
    %c0_i32_1 = arith.constant 0 : i32
    return %c0_i32, %c0_i32_0 : i32, i32
  }
  func.func @transform_8(%arg0: i32) -> (i32, i32) {
    %c0_i32 = arith.constant 0 : i32
    %c0_i32_0 = arith.constant 0 : i32
    return %arg0, %c0_i32 : i32, i32
  }
}

</mosaic_0001>

<bundles_post_ra>
// kernel: forward.1
= control target key start
LH: loop header
LB: loop body
LE: loop exit
PB: predicated region body
PF: predicated region fallthrough
CT: control target
= control target key end

     0   :  { %13 = vsyncpa [#allocation3], 0  ;;  %s1052_s0 = inlined_call_operand.vmem [shape: bf16[8,32], index: 0, kind: input, shape index: {}]   ;;  %s1053_s1 = inlined_call_operand.vmem [shape: bf16[8,32], index: 1, kind: input, shape index: {}]   ;;  %s1054_s2 = inlined_call_operand.hbm [shape: bf16[32,256], index: 2, kind: input, shape index: {}]   ;;  %s1055_s3 = inlined_call_operand.vmem [shape: f32[1,256], index: 3, kind: input, shape index: {}, may-alias: {3,5}]   ;;  %s1056_s4 = inlined_call_operand.hbm [shape: bf16[32,256], index: 4, kind: input, shape index: {}]   ;;  %s1057_s5 = inlined_call_operand.vmem [shape: f32[1,256], index: 5, kind: input, shape index: {}, may-alias: {3,5}]   ;;  %s1058_s6 = inlined_call_operand.vmem [shape: bf16[256,256], index: 6, kind: input, shape index: {}]   ;;  %s1059_s7 = inlined_call_operand.hbm [shape: f32[1,256], index: 7, kind: input, shape index: {}]   ;;  %s1060_s8 = inlined_call_operand.vmem [shape: f32[8,384], index: 8, kind: output, shape index: {}]  }
   0x1   :  { %14 = vsyncpa [#allocation5], 0  ;;  %s38_s29 = sshll.u32 %s1056_s4, 4  ;;  %s776_s30 = smov [#allocation4]   ;;  %s39_s29 = int_to_ptr.hbm [resolvable:$true] %s38_s29 }
   0x2   :  { %s40_s9 = sshll.u32 %s776_s30, 4  ;;  %s23_s12 = sshll.u32 %s1054_s2, 4  ;;  %s41_s9 = int_to_ptr.vmem [resolvable:$true] %s40_s9  ;;  %s24_s12 = int_to_ptr.hbm [resolvable:$true] %s23_s12 }
   0x3   :  { %s777_s13 = smov 128   ;;  %s778_s14 = smov 8  }
   0x4   :  { %46 = dma.hbm_to_vmem [thread:$0]  %s39_s29, 512, %s41_s9, [#allocation5], %s777_s13, %s777_s13, %s778_s14  }
   0x5   :  { %s779_s15 = smov [#allocation2]   ;;  %s56_s19 = sshll.u32 %s1059_s7, 4  ;;  %s57_s19 = int_to_ptr.hbm [resolvable:$true] %s56_s19 }
   0x6   :  { %s25_s16 = sshll.u32 %s779_s15, 4  ;;  %s780_s4 = smov [#allocation6]   ;;  %s26_s16 = int_to_ptr.vmem [resolvable:$true] %s25_s16 }
   0x7   :  { %31 = dma.hbm_to_vmem [thread:$0]  %s24_s12, 512, %s26_s16, [#allocation3], %s777_s13, %s777_s13, %s778_s14  }
   0x8   :  { %s58_s20 = sshll.u32 %s780_s4, 4  ;;  %s59_s20 = int_to_ptr.vmem [resolvable:$true] %s58_s20 }
   0x9   :  { %61 = dma.hbm_to_vmem [thread:$0]  %s57_s19, 32, %s59_s20, [#allocation5]  }
   0xa   :  { %772 = dma.done.wait [#allocation3], 512  }
   0xb   :  { %773 = vsyncadd [#allocation3], 4294966784 }
   0xc   :  { %774 = dma.done.wait [#allocation5], 544  }
   0xd   :  { %775 = vsyncadd [#allocation5], 4294966752  ;;  %v489_v0 = vld [vmem:[#allocation2 + $0x10] sm:$0xf]  ;;  %v646_v1 = vld [vmem:[#allocation2 + $0x14] sm:$0xf0] }
   0xe   :  { %v645_v2 = vld [vmem:[#allocation2 + $0x14] sm:$0xf]  ;;  %v490_v3 = vor.u32 %v646_v1, %v489_v0  ;;  %v491_v4 = vld [vmem:[#allocation2 + $0x18] sm:$0xf0]  ;;  %v507_v5 = vld [vmem:[#allocation4 + $0x10] sm:$0xf] }
   0xf   :  { %v650_v6 = vld [vmem:[#allocation4 + $0x14] sm:$0xf0]  ;;  %v494_v7 = vor.u32 %v645_v2, %v491_v4  ;;  %v649_v9 = vld [vmem:[#allocation4 + $0x14] sm:$0xf]  ;;  %v509_v10 = vld [vmem:[#allocation4 + $0x18] sm:$0xf0] }
  0x10   :  { %v508_v8 = vor.u32 %v650_v6, %v507_v5  ;;  %v481_v11 = vld [vmem:[#allocation2] sm:$0xf]  ;;  %116 = vmatpush.bf16.msra.mxu0 %v490_v3  ;;  %v512_v12 = vor.u32 %v649_v9, %v509_v10  ;;  %v644_v13 = vld [vmem:[#allocation2 + $0x4] sm:$0xf0]  ;;  %v643_v14 = vld [vmem:[#allocation2 + $0x4] sm:$0xf] }
  0x11   :  { %v483_v15 = vld [vmem:[#allocation2 + $0x8] sm:$0xf0]  ;;  %129 = vmatpush.bf16.msra.mxu1 %v494_v7  ;;  %v482_v16 = vor.u32 %v644_v13, %v481_v11  ;;  %v499_v18 = vld [vmem:[#allocation4] sm:$0xf]  ;;  %v648_v19 = vld [vmem:[#allocation4 + $0x4] sm:$0xf0] }
  0x12   :  { %178 = vmatpush.bf16.msra.mxu2 %v508_v8  ;;  %v486_v17 = vor.u32 %v643_v14, %v483_v15  ;;  %v647_v20 = vld [vmem:[#allocation4 + $0x4] sm:$0xf]  ;;  %191 = vmatpush.bf16.msra.mxu3 %v512_v12  ;;  %v500_v21 = vor.u32 %v648_v19, %v499_v18  ;;  %v501_v22 = vld [vmem:[#allocation4 + $0x8] sm:$0xf0]  ;;  %v75_v23 = vld [vmem:[%s1052_s0] sm:$0xf] }
  0x13   :  { %vm106_vm0 = vcmask 261120   ;;  %v504_v24 = vor.u32 %v647_v20, %v501_v22  ;;  %v138_v25 = vld [vmem:[%s1053_s1] sm:$0xf]  ;;  %v573_v26 = vld [vmem:[%s1058_s6 + $0x70] sm:$0xf] }
  0x14   :  { %v666_v27 = vld [vmem:[%s1058_s6 + $0x74] sm:$0xf0]  ;;  %v637_v28 = vld [vmem:[%s1058_s6 + $0xf0] sm:$0xf]  ;;  %117 = vmatpush.bf16.msra.mxu0 %v482_v16  ;;  %v665_v31 = vld [vmem:[%s1058_s6 + $0x74] sm:$0xf] }
  0x15   :  { %v574_v29 = vor.u32 %v666_v27, %v573_v26  ;;  %v682_v30 = vld [vmem:[%s1058_s6 + $0xf4] sm:$0xf0]  ;;  %v575_v32 = vld [vmem:[%s1058_s6 + $0x78] sm:$0xf0]  ;;  %130 = vmatpush.bf16.msra.mxu1 %v486_v17  ;;  %v681_v35 = vld [vmem:[%s1058_s6 + $0xf4] sm:$0xf] }
  0x16   :  { %179 = vmatpush.bf16.msra.mxu2 %v500_v21  ;;  %v638_v33 = vor.u32 %v682_v30, %v637_v28  ;;  %v578_v34 = vor.u32 %v665_v31, %v575_v32  ;;  %v639_v36 = vld [vmem:[%s1058_s6 + $0xf8] sm:$0xf0]  ;;  %v565_v37 = vld [vmem:[%s1058_s6 + $0x60] sm:$0xf]  ;;  %192 = vmatpush.bf16.msra.mxu3 %v504_v24  ;;  %v664_v39 = vld [vmem:[%s1058_s6 + $0x64] sm:$0xf0] }
  0x17   :  { %v642_v38 = vor.u32 %v681_v35, %v639_v36  ;;  %v629_v40 = vld [vmem:[%s1058_s6 + $0xe0] sm:$0xf]  ;;  %v680_v41 = vld [vmem:[%s1058_s6 + $0xe4] sm:$0xf0]  ;;  %495 = vmatmul.msk.bf16.vlgmr.msra.gmra.mxu0 %vm106_vm0, %v75_v23  ;;  %v566_v42 = vor.u32 %v664_v39, %v565_v37  ;;  %v663_v44 = vld [vmem:[%s1058_s6 + $0x64] sm:$0xf] }
  0x18   :  { %408 = vmatpush.bf16.msrb.mxu0 %v574_v29  ;;  %v630_v43 = vor.u32 %v680_v41, %v629_v40  ;;  %v567_v45 = vld [vmem:[%s1058_s6 + $0x68] sm:$0xf0]  ;;  %v679_v46 = vld [vmem:[%s1058_s6 + $0xe4] sm:$0xf]  ;;  %496 = vmatmul.msk.bf16.vlgmr.msra.gmra.mxu1 %vm106_vm0, %v75_v23  ;;  %v557_v50 = vld [vmem:[%s1058_s6 + $0x50] sm:$0xf] }
  0x19   :  { %421 = vmatpush.bf16.msrb.mxu1 %v638_v33  ;;  %513 = vmatmul.msk.bf16.vlgmr.msra.gmra.mxu2 %vm106_vm0, %v138_v25  ;;  %v631_v47 = vld [vmem:[%s1058_s6 + $0xe8] sm:$0xf0]  ;;  %v570_v48 = vor.u32 %v663_v44, %v567_v45  ;;  %v662_v51 = vld [vmem:[%s1058_s6 + $0x54] sm:$0xf0]  ;;  %v621_v52 = vld [vmem:[%s1058_s6 + $0xd0] sm:$0xf] }
  0x1a   :  { %514 = vmatmul.msk.bf16.vlgmr.msra.gmra.mxu3 %vm106_vm0, %v138_v25  ;;  %434 = vmatpush.bf16.msrb.mxu2 %v578_v34  ;;  %v634_v49 = vor.u32 %v679_v46, %v631_v47  ;;  %v558_v53 = vor.u32 %v662_v51, %v557_v50  ;;  %v678_v54 = vld [vmem:[%s1058_s6 + $0xd4] sm:$0xf0]  ;;  %v661_v55 = vld [vmem:[%s1058_s6 + $0x54] sm:$0xf]  ;;  %v559_v56 = vld [vmem:[%s1058_s6 + $0x58] sm:$0xf0] }
  0x1b   :  { %447 = vmatpush.bf16.msrb.mxu3 %v642_v38  ;;  %v622_v57 = vor.u32 %v678_v54, %v621_v52  ;;  %v562_v58 = vor.u32 %v661_v55, %v559_v56  ;;  %v677_v59 = vld [vmem:[%s1058_s6 + $0xd4] sm:$0xf]  ;;  %v623_v60 = vld [vmem:[%s1058_s6 + $0xd8] sm:$0xf0]  ;;  %v549_v62 = vld [vmem:[%s1058_s6 + $0x40] sm:$0xf] }
  0x1c   :  { %409 = vmatpush.bf16.msrb.mxu0 %v566_v42  ;;  %v626_v61 = vor.u32 %v677_v59, %v623_v60  ;;  %v660_v63 = vld [vmem:[%s1058_s6 + $0x44] sm:$0xf0]  ;;  %v613_v0 = vld [vmem:[%s1058_s6 + $0xc0] sm:$0xf]  ;;  %v659_v3 = vld [vmem:[%s1058_s6 + $0x44] sm:$0xf] }
  0x1d   :  { %422 = vmatpush.bf16.msrb.mxu1 %v630_v43  ;;  %v550_v1 = vor.u32 %v660_v63, %v549_v62  ;;  %v676_v2 = vld [vmem:[%s1058_s6 + $0xc4] sm:$0xf0]  ;;  %v551_v4 = vld [vmem:[%s1058_s6 + $0x48] sm:$0xf0]  ;;  %v675_v7 = vld [vmem:[%s1058_s6 + $0xc4] sm:$0xf] }
  0x1e   :  { %435 = vmatpush.bf16.msrb.mxu2 %v570_v48  ;;  %v614_v5 = vor.u32 %v676_v2, %v613_v0  ;;  %v554_v6 = vor.u32 %v659_v3, %v551_v4  ;;  %v615_v8 = vld [vmem:[%s1058_s6 + $0xc8] sm:$0xf0]  ;;  %v541_v10 = vld [vmem:[%s1058_s6 + $0x30] sm:$0xf]  ;;  %v658_v11 = vld [vmem:[%s1058_s6 + $0x34] sm:$0xf0] }
  0x1f   :  { %448 = vmatpush.bf16.msrb.mxu3 %v634_v49  ;;  %v618_v9 = vor.u32 %v675_v7, %v615_v8  ;;  %v605_v12 = vld [vmem:[%s1058_s6 + $0xb0] sm:$0xf]  ;;  %v542_v13 = vor.u32 %v658_v11, %v541_v10  ;;  %v674_v14 = vld [vmem:[%s1058_s6 + $0xb4] sm:$0xf0]  ;;  %v657_v15 = vld [vmem:[%s1058_s6 + $0x34] sm:$0xf] }
  0x20   :  { %410 = vmatpush.bf16.msrb.mxu0 %v558_v53  ;;  %v543_v16 = vld [vmem:[%s1058_s6 + $0x38] sm:$0xf0]  ;;  %v606_v17 = vor.u32 %v674_v14, %v605_v12  ;;  %v673_v19 = vld [vmem:[%s1058_s6 + $0xb4] sm:$0xf]  ;;  %v533_v22 = vld [vmem:[%s1058_s6 + $0x20] sm:$0xf] }
  0x21   :  { %423 = vmatpush.bf16.msrb.mxu1 %v622_v57  ;;  %v546_v18 = vor.u32 %v657_v15, %v543_v16  ;;  %v607_v20 = vld [vmem:[%s1058_s6 + $0xb8] sm:$0xf0]  ;;  %v656_v23 = vld [vmem:[%s1058_s6 + $0x24] sm:$0xf0]  ;;  %v597_v24 = vld [vmem:[%s1058_s6 + $0xa0] sm:$0xf] }
  0x22   :  { %436 = vmatpush.bf16.msrb.mxu2 %v562_v58  ;;  %v610_v21 = vor.u32 %v673_v19, %v607_v20  ;;  %v534_v25 = vor.u32 %v656_v23, %v533_v22  ;;  %v672_v26 = vld [vmem:[%s1058_s6 + $0xa4] sm:$0xf0]  ;;  %v655_v27 = vld [vmem:[%s1058_s6 + $0x24] sm:$0xf]  ;;  %v535_v28 = vld [vmem:[%s1058_s6 + $0x28] sm:$0xf0] }
  0x23   :  { %449 = vmatpush.bf16.msrb.mxu3 %v626_v61  ;;  %v598_v29 = vor.u32 %v672_v26, %v597_v24  ;;  %v538_v30 = vor.u32 %v655_v27, %v535_v28  ;;  %v671_v31 = vld [vmem:[%s1058_s6 + $0xa4] sm:$0xf]  ;;  %v599_v32 = vld [vmem:[%s1058_s6 + $0xa8] sm:$0xf0]  ;;  %v525_v34 = vld [vmem:[%s1058_s6 + $0x10] sm:$0xf] }
  0x24   :  { %411 = vmatpush.bf16.msrb.mxu0 %v550_v1  ;;  %v602_v33 = vor.u32 %v671_v31, %v599_v32  ;;  %v654_v35 = vld [vmem:[%s1058_s6 + $0x14] sm:$0xf0]  ;;  %v589_v36 = vld [vmem:[%s1058_s6 + $0x90] sm:$0xf]  ;;  %v653_v39 = vld [vmem:[%s1058_s6 + $0x14] sm:$0xf] }
  0x25   :  { %424 = vmatpush.bf16.msrb.mxu1 %v614_v5  ;;  %v526_v37 = vor.u32 %v654_v35, %v525_v34  ;;  %v670_v38 = vld [vmem:[%s1058_s6 + $0x94] sm:$0xf0]  ;;  %v527_v40 = vld [vmem:[%s1058_s6 + $0x18] sm:$0xf0]  ;;  %v669_v43 = vld [vmem:[%s1058_s6 + $0x94] sm:$0xf] }
  0x26   :  { %437 = vmatpush.bf16.msrb.mxu2 %v554_v6  ;;  %v590_v41 = vor.u32 %v670_v38, %v589_v36  ;;  %v530_v42 = vor.u32 %v653_v39, %v527_v40  ;;  %v591_v44 = vld [vmem:[%s1058_s6 + $0x98] sm:$0xf0]  ;;  %v517_v45 = vld [vmem:[%s1058_s6] sm:$0xf]  ;;  %v652_v47 = vld [vmem:[%s1058_s6 + $0x4] sm:$0xf0] }
  0x27   :  { %450 = vmatpush.bf16.msrb.mxu3 %v618_v9  ;;  %v594_v46 = vor.u32 %v669_v43, %v591_v44  ;;  %v581_v48 = vld [vmem:[%s1058_s6 + $0x80] sm:$0xf]  ;;  %v668_v49 = vld [vmem:[%s1058_s6 + $0x84] sm:$0xf0]  ;;  %v518_v50 = vor.u32 %v652_v47, %v517_v45  ;;  %v651_v52 = vld [vmem:[%s1058_s6 + $0x4] sm:$0xf] }
  0x28   :  { %412 = vmatpush.bf16.msrb.mxu0 %v542_v13  ;;  %v582_v51 = vor.u32 %v668_v49, %v581_v48  ;;  %v519_v53 = vld [vmem:[%s1058_s6 + $0x8] sm:$0xf0]  ;;  %v667_v54 = vld [vmem:[%s1058_s6 + $0x84] sm:$0xf]  ;;  %v80_v58 = vld [vmem:[%s1055_s3] sm:$0x3] }
  0x29   :  { %425 = vmatpush.bf16.msrb.mxu1 %v606_v17  ;;  %v522_v55 = vor.u32 %v651_v52, %v519_v53  ;;  %v583_v56 = vld [vmem:[%s1058_s6 + $0x88] sm:$0xf0]  ;;  %v82_v59 = vperm.slane %v80_v58, 0  ;;  %v83_v60 = vperm.slane %v80_v58, 1  ;;  %v143_v0 = vld [vmem:[%s1057_s5] sm:$0x3] }
  0x2a   :  { %438 = vmatpush.bf16.msrb.mxu2 %v546_v18  ;;  %v586_v57 = vor.u32 %v667_v54, %v583_v56  ;;  %v145_v2 = vperm.slane %v143_v0, 0  ;;  %v146_v3 = vperm.slane %v143_v0, 1  ;;  %v242_v26 = vld [vmem:[#allocation6] sm:$0x3] }
  0x2b   :  { %451 = vmatpush.bf16.msrb.mxu3 %v610_v21  ;;  %v244_v27 = vperm.slane %v242_v26, 0  ;;  %v245_v32 = vperm.slane %v242_v26, 1 }
  0x2c   :  { %413 = vmatpush.bf16.msrb.mxu0 %v534_v25 }
  0x2d   :  { %426 = vmatpush.bf16.msrb.mxu1 %v598_v29 }
  0x2e   :  { %439 = vmatpush.bf16.msrb.mxu2 %v538_v30 }
  0x2f   :  { %452 = vmatpush.bf16.msrb.mxu3 %v602_v33 }
  0x30   :  { %414 = vmatpush.bf16.msrb.mxu0 %v526_v37 }
  0x31   :  { %427 = vmatpush.bf16.msrb.mxu1 %v590_v41 }
  0x32   :  { %440 = vmatpush.bf16.msrb.mxu2 %v530_v42 }
  0x33   :  { %453 = vmatpush.bf16.msrb.mxu3 %v594_v46 }
  0x34   :  { %415 = vmatpush.bf16.msrb.mxu0 %v518_v50 }
  0x35   :  { %428 = vmatpush.bf16.msrb.mxu1 %v582_v51 }
  0x36   :  { %441 = vmatpush.bf16.msrb.mxu2 %v522_v55 }
  0x37   :  { %454 = vmatpush.bf16.msrb.mxu3 %v586_v57 }
  0x94   :  { %v119_v61 = vpop.f32.mrf.mxu0 }
  0x95   :  { %v120_v62 = vadd.f32 %v119_v61, %v82_v59  ;;  %v132_v63 = vpop.f32.mrf.mxu1 }
  0x96   :  { %v133_v1 = vadd.f32 %v132_v63, %v83_v60 }
  0x97   :  { %688 = vtanh.f32 %v120_v62 }
  0x98   :  { %690 = vtanh.f32 %v133_v1 }
  0x9c   :  { %v181_v4 = vpop.f32.mrf.mxu2  ;;  %v121_v7 = vpop.f32.mrf.mxu0 }
  0x9d   :  { %v182_v5 = vadd.f32 %v181_v4, %v145_v2  ;;  %v194_v6 = vpop.f32.mrf.mxu3  ;;  %v134_v9 = vpop.f32.mrf.mxu1 }
  0x9e   :  { %v195_v8 = vadd.f32 %v194_v6, %v146_v3  ;;  %v689_v10 = vpop.eup %688 }
  0x9f   :  { %692 = vtanh.f32 %v182_v5  ;;  %v691_v11 = vpop.eup %690 }
  0xa0   :  { %694 = vtanh.f32 %v195_v8  ;;  %v200_v12 = vpack.c.bf16 %v691_v11, %v689_v10 }
  0xa2   :  { %v202_v18 = vunpack.c.l.bf16 %v200_v12  ;;  %v203_v19 = vunpack.c.h.bf16 %v200_v12 }
  0xa4   :  { %v183_v13 = vpop.f32.mrf.mxu2 }
  0xa5   :  { %v693_v14 = vpop.eup %692  ;;  %v196_v15 = vpop.f32.mrf.mxu3 }
  0xa6   :  { %v695_v16 = vpop.eup %694 }
  0xa7   :  { %v201_v17 = vpack.c.bf16 %v695_v16, %v693_v14 }
  0xa9   :  { %v204_v20 = vunpack.c.l.bf16 %v201_v17  ;;  %v205_v21 = vunpack.c.h.bf16 %v201_v17 }
  0xab   :  { %v206_v22 = vmul.f32 %v204_v20, %v202_v18  ;;  %v207_v23 = vmul.f32 %v205_v21, %v203_v19 }
  0xad   :  { %v208_v24 = vpack.c.bf16 %v206_v22, %v206_v22  ;;  %v209_v25 = vpack.c.bf16 %v207_v23, %v207_v23 }
  0xaf   :  { %416 = vmatmul.bf16.vlgmr.msrb.gmra.mxu0 %v208_v24  ;;  %429 = vmatmul.bf16.vlgmr.msrb.gmra.mxu1 %v209_v25 }
  0xb0   :  { %442 = vmatmul.bf16.vlgmr.msrb.gmra.mxu2 %v208_v24  ;;  %455 = vmatmul.bf16.vlgmr.msrb.gmra.mxu3 %v209_v25 }
 0x12c   :  { %v417_v28 = vpop.f32.mrf.mxu0  ;;  %v430_v29 = vpop.f32.mrf.mxu1 }
 0x12d   :  { %v418_v30 = vadd.f32 %v417_v28, %v244_v27 }
 0x12f   :  { %v431_v31 = vadd.f32 %v430_v29, %v418_v30 }
 0x131   :  { %470 = vst [vmem:[%s1060_s8] sm:$0xff] %v431_v31 }
 0x133   :  { %v443_v33 = vpop.f32.mrf.mxu2  ;;  %v456_v34 = vpop.f32.mrf.mxu3 }
 0x134   :  { %v444_v35 = vadd.f32 %v443_v33, %v245_v32  ;;  %v419_v36 = vpop.f32.mrf.mxu0  ;;  %v432_v37 = vpop.f32.mrf.mxu1 }
 0x136   :  { %v457_v38 = vadd.f32 %v456_v34, %v444_v35 }
 0x138   :  { %471 = vst [vmem:[%s1060_s8 + $0x8] sm:$0xff] %v457_v38  ;;  %460 = vmax.xlane.f32.xlu0 %v457_v38 }
 0x13b   :  { %v445_v39 = vpop.f32.mrf.mxu2  ;;  %v458_v40 = vpop.f32.mrf.mxu3 }
 0x1ab   :  { %v461_v41 = vpop.xlane.xlu0 %460 }
 0x1ac   :  { %v462_v42 = vsub.f32 %v457_v38, %v461_v41 }
 0x1ae   :  { %v463_v43 = vmul.f32 1.442695, %v462_v42 }
 0x1b0   :  { %696 = vpow2.f32 %v463_v43 }
 0x1b6   :  { %v697_v44 = vpop.eup %696 }
 0x1b7   :  { %465 = vadd.xlane.f32.xlu0 %v697_v44 }
 0x22a   :  { %v466_v45 = vpop.xlane.xlu0 %465 }
 0x22b   :  { %698 = vlog2.f32 %v466_v45 }
 0x231   :  { %v699_v46 = vpop.eup %698 }
 0x232   :  { %v468_v47 = vmul.f32 0.6931472, %v699_v46 }
 0x234   :  { %v469_v48 = vsub.f32 %v462_v42, %v468_v47 }
 0x236   :  { %472 = vst [vmem:[%s1060_s8 + $0x10] sm:$0xff] %v469_v48 }
 0x237   :  { %477 = vsyncpa [#allocation3], 1 }
 0x238   :  { %478 = vsyncpa [#allocation5], 1 }

</bundles_post_ra>
